<compile_context>
chip_gen: v6e
topology: v6e:2x2x1
jax: 0.10.0
libtpu: 0.0.40
codegen_flags: <defaults>
</compile_context>

<pallas_src>
import jax
import jax.numpy as jnp
from jax.experimental import pallas as pl
from jax.experimental.pallas import tpu as pltpu

# Padded (lane-dense) internal layer sizes.
IN_F = 2
H1_P = 128    # 100 -> 128
H2_P = 256    # 200 -> 256
OUT_P = 128   # 5   -> 128 (internal matmul width; only 5 lanes stored)
OUT_F = 5

TB_MAX = 1024  # max batch-tile rows per grid step


def _round_up(n, m):
    return ((n + m - 1) // m) * m


def _mlp_kernel(x_ref, w1_ref, b1_ref, w2_ref, b2_ref, w3_ref, b3_ref, o_ref):
    x = x_ref[...]                      # [TB, 2] f32
    w1 = w1_ref[...]                    # [2, 128] f32

    # fc1 (K=2): two VPU broadcast-FMAs instead of an MXU matmul.  The lane
    # broadcasts stay in-kernel (XLU has slack); do NOT hoist to the wrapper.
    h1 = x[:, 0:1] * w1[0:1, :] + x[:, 1:2] * w1[1:2, :] + b1_ref[...]
    h1 = jnp.maximum(h1, 0.0)           # [TB, 128] f32

    # fc2: bf16 MXU operands, f32 accumulation; bias/ReLU in f32.
    h2 = jnp.dot(h1.astype(jnp.bfloat16), w2_ref[...],
                 preferred_element_type=jnp.float32)
    h2 = jnp.maximum(h2 + b2_ref[...], 0.0)   # [TB, 256] f32

    # fc3: bf16 MXU operands, f32 accumulation (full 128-lane matmul against
    # zero-padded w3), then store only the 5 real Q-value lanes.
    out = jnp.dot(h2.astype(jnp.bfloat16), w3_ref[...],
                  preferred_element_type=jnp.float32) + b3_ref[...]
    o_ref[...] = out[:, :OUT_F].astype(o_ref.dtype)        # [TB, 5] f32


@jax.jit
def net_forward(x, params):
    """x: [B, 2] float32. Returns [B, 5] float32 (matches the PyTorch Net)."""
    w1, b1, w2, b2, w3, b3 = (params[k] for k in ("w1", "b1", "w2", "b2", "w3", "b3"))

    B = x.shape[0]
    # >= 2 grid steps whenever B > 8, so the "parallel" batch axis can be
    # split across v7x's two TensorCores; cap at TB_MAX for very large B.
    TB = min(TB_MAX, max(8, _round_up(pl.cdiv(B, 2), 8)))
    grid = (pl.cdiv(B, TB),)   # partial last block handled by masked writes

    tiled = lambda shape: pl.BlockSpec(shape, lambda i: (i, 0))       # batch-tiled
    resident = lambda shape: pl.BlockSpec(shape, lambda i: (0, 0))    # VMEM-resident

    flops = 2 * B * (IN_F * H1_P + H1_P * H2_P + H2_P * OUT_P)
    w_bytes = int(w1.size * 4 + b1.size * 4 + w2.size * 2 + b2.size * 4
                  + w3.size * 2 + b3.size * 4)
    bytes_accessed = B * (IN_F * 4 + OUT_F * 4) + w_bytes

    return pl.pallas_call(
        _mlp_kernel,
        out_shape=jax.ShapeDtypeStruct((B, OUT_F), jnp.float32),
        grid=grid,
        in_specs=[
            tiled((TB, IN_F)),
            resident(w1.shape), resident(b1.shape),
            resident(w2.shape), resident(b2.shape),
            resident(w3.shape), resident(b3.shape),
        ],
        out_specs=tiled((TB, OUT_F)),
        compiler_params=pltpu.CompilerParams(
            dimension_semantics=("parallel",)),
        cost_estimate=pl.CostEstimate(flops=flops,
                                      transcendentals=0,
                                      bytes_accessed=bytes_accessed),
    )(x, w1, b1, w2, b2, w3, b3)


def init_params(key):
    """PyTorch nn.Linear-style init (uniform +/- 1/sqrt(fan_in)), zero-padded
    to lane-dense sizes.  w2/w3 are stored bf16 (MXU operands); everything
    element-wise stays f32."""
    dims = [(2, 100), (100, 200), (200, 5)]
    padded = [(IN_F, H1_P), (H1_P, H2_P), (H2_P, OUT_P)]
    params = {}
    keys = jax.random.split(key, 2 * len(dims))
    for i, ((fan_in, fan_out), (pin, pout)) in enumerate(zip(dims, padded)):
        bound = 1.0 / jnp.sqrt(float(fan_in))
        w = jax.random.uniform(keys[2 * i], (fan_in, fan_out),
                               minval=-bound, maxval=bound, dtype=jnp.float32)
        b = jax.random.uniform(keys[2 * i + 1], (1, fan_out),
                               minval=-bound, maxval=bound, dtype=jnp.float32)
        # Zero-pad to lane-dense shapes (padding rows/cols are exact zeros,
        # so ReLU keeps padded lanes inert -> no padding leakage).
        w = jnp.pad(w, ((0, pin - fan_in), (0, pout - fan_out)))
        b = jnp.pad(b, ((0, 0), (0, pout - fan_out)))
        params[f"w{i + 1}"] = w
        params[f"b{i + 1}"] = b
    # MXU operands for fc2/fc3 stored in bf16.
    params["w2"] = params["w2"].astype(jnp.bfloat16)
    params["w3"] = params["w3"].astype(jnp.bfloat16)
    return params
    # TODO(synk): bf16 MXU operands give ~1e-2 rel. error vs. a true f32
    # PyTorch Linear; keep f32 weights + f32 dots if exact parity is needed.


def ref_forward(x, params):
    """Plain-JAX reference with identical numerics (bf16 MXU ops, f32 accum)."""
    h1 = jnp.maximum(x @ params["w1"] + params["b1"], 0.0)
    h2 = jnp.dot(h1.astype(jnp.bfloat16), params["w2"],
                 preferred_element_type=jnp.float32) + params["b2"]
    h2 = jnp.maximum(h2, 0.0)
    out = jnp.dot(h2.astype(jnp.bfloat16), params["w3"],
                  preferred_element_type=jnp.float32) + params["b3"]
    return out[:, :OUT_F]


if __name__ == "__main__":
    key = jax.random.PRNGKey(0)
    pkey, xkey, xkey2 = jax.random.split(key, 3)

    params = init_params(pkey)

    # Small batch (as implied by Linear(2, 100): 2-dim observations).
    x_small = jax.random.normal(xkey, (2, 2), dtype=jnp.float32)
    out_small = jax.block_until_ready(net_forward(x_small, params))
    assert out_small.shape == (2, OUT_F)
    exp_small = ref_forward(x_small, params)
    assert jnp.allclose(out_small, exp_small, atol=1e-2, rtol=1e-2)

    # Larger, non-multiple-of-tile batch: exercises the 2-step batch grid and
    # the masked partial last block (no wrapper-side padding anymore).
    x_big = jax.random.normal(xkey2, (300, 2), dtype=jnp.float32)
    out_big = jax.block_until_ready(net_forward(x_big, params))
    assert out_big.shape == (300, OUT_F)
    exp_big = ref_forward(x_big, params)
    assert jnp.allclose(out_big, exp_big, atol=1e-2, rtol=1e-2)

    print("KERNEL_OK")
</pallas_src>

<mosaic_0001>
module attributes {stable_mosaic.version = 11 : i64} {
  func.func @_mlp_kernel(%arg0: i32, %arg1: memref<8x2xf32, #tpu.memory_space<vmem>>, %arg2: memref<2x128xf32, #tpu.memory_space<vmem>>, %arg3: memref<1x128xf32, #tpu.memory_space<vmem>>, %arg4: memref<128x256xbf16, #tpu.memory_space<vmem>>, %arg5: memref<1x256xf32, #tpu.memory_space<vmem>>, %arg6: memref<256x128xbf16, #tpu.memory_space<vmem>>, %arg7: memref<1x128xf32, #tpu.memory_space<vmem>>, %arg8: memref<8x5xf32, #tpu.memory_space<vmem>>) attributes {dimension_semantics = [#tpu.dimension_semantics<parallel>], iteration_bounds = array<i64: 1>, scalar_prefetch = 0 : i64, scratch_operands = 0 : i64, tpu.core_type = #tpu.core_type<tc>, window_params = [{transform_indices = @transform_0, window_bounds = array<i64: 8, 2>}, {pipeline_mode = #tpu.pipeline_mode<synchronous>, transform_indices = @transform_1, window_bounds = array<i64: 2, 128>}, {pipeline_mode = #tpu.pipeline_mode<synchronous>, transform_indices = @transform_2, window_bounds = array<i64: 1, 128>}, {pipeline_mode = #tpu.pipeline_mode<synchronous>, transform_indices = @transform_3, window_bounds = array<i64: 128, 256>}, {pipeline_mode = #tpu.pipeline_mode<synchronous>, transform_indices = @transform_4, window_bounds = array<i64: 1, 256>}, {pipeline_mode = #tpu.pipeline_mode<synchronous>, transform_indices = @transform_5, window_bounds = array<i64: 256, 128>}, {pipeline_mode = #tpu.pipeline_mode<synchronous>, transform_indices = @transform_6, window_bounds = array<i64: 1, 128>}, {transform_indices = @transform_7, window_bounds = array<i64: 8, 5>}]} {
    %c0 = arith.constant 0 : index
    %c0_0 = arith.constant 0 : index
    %0 = vector.load %arg1[%c0, %c0_0] : memref<8x2xf32, #tpu.memory_space<vmem>>, vector<8x2xf32>
    %c0_1 = arith.constant 0 : index
    %c0_2 = arith.constant 0 : index
    %1 = vector.load %arg2[%c0_1, %c0_2] : memref<2x128xf32, #tpu.memory_space<vmem>>, vector<2x128xf32>
    %2 = vector.extract_strided_slice %0 {offsets = [0, 0], sizes = [8, 1], strides = [1, 1]} : vector<8x2xf32> to vector<8x1xf32>
    %3 = vector.extract_strided_slice %1 {offsets = [0, 0], sizes = [1, 128], strides = [1, 1]} : vector<2x128xf32> to vector<1x128xf32>
    %4 = vector.broadcast %2 : vector<8x1xf32> to vector<8x128xf32>
    %5 = vector.broadcast %3 : vector<1x128xf32> to vector<8x128xf32>
    %6 = arith.mulf %4, %5 : vector<8x128xf32>
    %7 = vector.extract_strided_slice %0 {offsets = [0, 1], sizes = [8, 1], strides = [1, 1]} : vector<8x2xf32> to vector<8x1xf32>
    %8 = vector.extract_strided_slice %1 {offsets = [1, 0], sizes = [1, 128], strides = [1, 1]} : vector<2x128xf32> to vector<1x128xf32>
    %9 = vector.broadcast %7 : vector<8x1xf32> to vector<8x128xf32>
    %10 = vector.broadcast %8 : vector<1x128xf32> to vector<8x128xf32>
    %11 = arith.mulf %9, %10 : vector<8x128xf32>
    %12 = arith.addf %6, %11 : vector<8x128xf32>
    %c0_3 = arith.constant 0 : index
    %c0_4 = arith.constant 0 : index
    %13 = vector.load %arg3[%c0_3, %c0_4] : memref<1x128xf32, #tpu.memory_space<vmem>>, vector<1x128xf32>
    %14 = vector.broadcast %13 : vector<1x128xf32> to vector<8x128xf32>
    %15 = arith.addf %12, %14 : vector<8x128xf32>
    %cst = arith.constant 0.000000e+00 : f32
    %16 = vector.broadcast %cst : f32 to vector<8x128xf32>
    %17 = arith.maximumf %15, %16 : vector<8x128xf32>
    %18 = arith.truncf %17 : vector<8x128xf32> to vector<8x128xbf16>
    %c0_5 = arith.constant 0 : index
    %c0_6 = arith.constant 0 : index
    %19 = vector.load %arg4[%c0_5, %c0_6] : memref<128x256xbf16, #tpu.memory_space<vmem>>, vector<128x256xbf16>
    %cst_7 = arith.constant dense<0.000000e+00> : vector<8x256xf32>
    %20 = tpu.matmul %18, %19, %cst_7 {dimension_numbers = #tpu.dot_dimension_numbers<[1], [0], [0], [1], [0, 0, 1, 1], [], []>} : vector<8x128xbf16>, vector<128x256xbf16>, vector<8x256xf32> -> vector<8x256xf32>
    %c0_8 = arith.constant 0 : index
    %c0_9 = arith.constant 0 : index
    %21 = vector.load %arg5[%c0_8, %c0_9] : memref<1x256xf32, #tpu.memory_space<vmem>>, vector<1x256xf32>
    %22 = vector.broadcast %21 : vector<1x256xf32> to vector<8x256xf32>
    %23 = arith.addf %20, %22 : vector<8x256xf32>
    %cst_10 = arith.constant 0.000000e+00 : f32
    %24 = vector.broadcast %cst_10 : f32 to vector<8x256xf32>
    %25 = arith.maximumf %23, %24 : vector<8x256xf32>
    %26 = arith.truncf %25 : vector<8x256xf32> to vector<8x256xbf16>
    %c0_11 = arith.constant 0 : index
    %c0_12 = arith.constant 0 : index
    %27 = vector.load %arg6[%c0_11, %c0_12] : memref<256x128xbf16, #tpu.memory_space<vmem>>, vector<256x128xbf16>
    %cst_13 = arith.constant dense<0.000000e+00> : vector<8x128xf32>
    %28 = tpu.matmul %26, %27, %cst_13 {dimension_numbers = #tpu.dot_dimension_numbers<[1], [0], [0], [1], [0, 0, 1, 1], [], []>} : vector<8x256xbf16>, vector<256x128xbf16>, vector<8x128xf32> -> vector<8x128xf32>
    %c0_14 = arith.constant 0 : index
    %c0_15 = arith.constant 0 : index
    %29 = vector.load %arg7[%c0_14, %c0_15] : memref<1x128xf32, #tpu.memory_space<vmem>>, vector<1x128xf32>
    %30 = vector.broadcast %29 : vector<1x128xf32> to vector<8x128xf32>
    %31 = arith.addf %28, %30 : vector<8x128xf32>
    %32 = vector.extract_strided_slice %31 {offsets = [0, 0], sizes = [8, 5], strides = [1, 1]} : vector<8x128xf32> to vector<8x5xf32>
    %c0_16 = arith.constant 0 : index
    %c0_17 = arith.constant 0 : index
    %33 = vector.load %arg8[%c0_16, %c0_17] : memref<8x5xf32, #tpu.memory_space<vmem>>, vector<8x5xf32>
    tpu.vector_store %arg8[%c0_16, %c0_17], %32 {strides = array<i32>} : memref<8x5xf32, #tpu.memory_space<vmem>>, vector<8x5xf32>,
    return
  }
  func.func @transform_0(%arg0: i32) -> (i32, i32) {
    %c0_i32 = arith.constant 0 : i32
    %c0_i32_0 = arith.constant 0 : i32
    return %arg0, %c0_i32 : i32, i32
  }
  func.func @transform_1(%arg0: i32) -> (i32, i32) {
    %c0_i32 = arith.constant 0 : i32
    %c0_i32_0 = arith.constant 0 : i32
    %c0_i32_1 = arith.constant 0 : i32
    return %c0_i32, %c0_i32_0 : i32, i32
  }
  func.func @transform_2(%arg0: i32) -> (i32, i32) {
    %c0_i32 = arith.constant 0 : i32
    %c0_i32_0 = arith.constant 0 : i32
    %c0_i32_1 = arith.constant 0 : i32
    return %c0_i32, %c0_i32_0 : i32, i32
  }
  func.func @transform_3(%arg0: i32) -> (i32, i32) {
    %c0_i32 = arith.constant 0 : i32
    %c0_i32_0 = arith.constant 0 : i32
    %c0_i32_1 = arith.constant 0 : i32
    return %c0_i32, %c0_i32_0 : i32, i32
  }
  func.func @transform_4(%arg0: i32) -> (i32, i32) {
    %c0_i32 = arith.constant 0 : i32
    %c0_i32_0 = arith.constant 0 : i32
    %c0_i32_1 = arith.constant 0 : i32
    return %c0_i32, %c0_i32_0 : i32, i32
  }
  func.func @transform_5(%arg0: i32) -> (i32, i32) {
    %c0_i32 = arith.constant 0 : i32
    %c0_i32_0 = arith.constant 0 : i32
    %c0_i32_1 = arith.constant 0 : i32
    return %c0_i32, %c0_i32_0 : i32, i32
  }
  func.func @transform_6(%arg0: i32) -> (i32, i32) {
    %c0_i32 = arith.constant 0 : i32
    %c0_i32_0 = arith.constant 0 : i32
    %c0_i32_1 = arith.constant 0 : i32
    return %c0_i32, %c0_i32_0 : i32, i32
  }
  func.func @transform_7(%arg0: i32) -> (i32, i32) {
    %c0_i32 = arith.constant 0 : i32
    %c0_i32_0 = arith.constant 0 : i32
    return %arg0, %c0_i32 : i32, i32
  }
}

</mosaic_0001>

<bundles_post_ra>
// kernel: net_forward.1
= control target key start
LH: loop header
LB: loop body
LE: loop exit
PB: predicated region body
PF: predicated region fallthrough
CT: control target
= control target key end

     0   :  { %12 = vsyncpa [#allocation3], 0  ;;  %s764_s0 = inlined_call_operand.hbm [shape: f32[2,2], index: 0, kind: input, shape index: {}]   ;;  %s765_s1 = inlined_call_operand.vmem [shape: f32[2,128], index: 1, kind: input, shape index: {}]   ;;  %s766_s2 = inlined_call_operand.vmem [shape: f32[1,128], index: 2, kind: input, shape index: {}]   ;;  %s767_s3 = inlined_call_operand.hbm [shape: bf16[128,256], index: 3, kind: input, shape index: {}]   ;;  %s768_s4 = inlined_call_operand.hbm [shape: f32[1,256], index: 4, kind: input, shape index: {}]   ;;  %s769_s5 = inlined_call_operand.hbm [shape: bf16[256,128], index: 5, kind: input, shape index: {}]   ;;  %s770_s6 = inlined_call_operand.vmem [shape: f32[1,128], index: 6, kind: input, shape index: {}]   ;;  %s771_s7 = inlined_call_operand.hbm [shape: f32[2,5], index: 7, kind: output, shape index: {}]  }
   0x1   :  { %13 = vsyncpa [#allocation6], 0 }
   0x2   :  { %14 = vsyncpa [#allocation9], 0 }
   0x3   :  { %15 = vsyncpa [#allocation4], 0 }
   0x4   :  { %20 = vsyncadd [#allocation3], 96  ;;  %s681_s24 = smov [#allocation5]  }
   0x5   :  { %s37_s25 = sshll.u32 %s681_s24, 4  ;;  %s38_s25 = int_to_ptr.vmem [resolvable:$true] %s37_s25 }
   0x6   :  { %s581_s26 = scalar_lea.vmem %s38_s25, 2048  ;;  %p586_p1 = scmp.lt.s32.totalorder %s38_s25, %s38_s25 }
   0x7   :  { %p582_p0 = scmp.ne.s32.totalorder %s38_s25, %s581_s26  ;;  %p587_p2 = scmp.lt.s32.totalorder %s581_s26, %s581_s26 }
   0x9   :  { %p588_p3 = por %p587_p2, %p586_p1 }
   0xb   :  { %p589_p4 = pnand %p588_p3, %p582_p0 }
   0xd   :  { %592 = shalt.err (!%p589_p4)
}
   0xe   :  { %s682_s27 = smov 128   ;;  %s683_s28 = smov 8  }
   0xf   :  { %43 = dma.hbm_to_vmem [thread:$0]  %s767_s3, 2048, %s38_s25, [#allocation6], %s682_s27, %s682_s27, %s683_s28  }
  0x10   :  { %s684_s8 = smov [#allocation2]  }
  0x11   :  { %s21_s9 = sshll.u32 %s684_s8, 4  ;;  %s22_s9 = int_to_ptr.vmem [resolvable:$true] %s21_s9 }
  0x12   :  { %s601_s10 = scalar_lea.vmem %s22_s9, 32  ;;  %s605_s11 = scalar_lea.vmem %s22_s9, 128 }
  0x13   :  { %p602_p5 = scmp.ne.s32.totalorder %s22_s9, %s601_s10  ;;  %p606_p6 = scmp.lt.s32.totalorder %s22_s9, %s22_s9 }
  0x14   :  { %p607_p7 = scmp.lt.s32.totalorder %s605_s11, %s601_s10 }
  0x16   :  { %p608_p8 = por %p607_p7, %p606_p6 }
  0x18   :  { %p609_p9 = pnand %p608_p8, %p602_p5 }
  0x1a   :  { %612 = shalt.err (!%p609_p9)
}
  0x1b   :  { %s685_s12 = smov 32   ;;  %s686_s13 = smov 2  }
  0x1c   :  { %27 = dma.hbm_to_vmem [thread:$0]  %s764_s0, 32, %s22_s9, [#allocation3], %s685_s12, %s685_s12, %s686_s13  }
  0x1d   :  { %s687_s3 = smov [#allocation7]   ;;  %s688_s17 = smov [#allocation8]  }
  0x1e   :  { %s50_s16 = sshll.u32 %s687_s3, 4  ;;  %s59_s18 = sshll.u32 %s688_s17, 4  ;;  %s51_s16 = int_to_ptr.vmem [resolvable:$true] %s50_s16  ;;  %s60_s18 = int_to_ptr.vmem [resolvable:$true] %s59_s18 }
  0x1f   :  { %s621_s19 = scalar_lea.vmem %s51_s16, 32  ;;  %p626_p11 = scmp.lt.s32.totalorder %s51_s16, %s51_s16 }
  0x20   :  { %p622_p10 = scmp.ne.s32.totalorder %s51_s16, %s621_s19  ;;  %p627_p12 = scmp.lt.s32.totalorder %s621_s19, %s621_s19 }
  0x22   :  { %p628_p13 = por %p627_p12, %p626_p11 }
  0x24   :  { %p629_p0 = pnand %p628_p13, %p622_p10 }
  0x26   :  { %632 = shalt.err (!%p629_p0)
}
  0x27   :  { %53 = dma.hbm_to_vmem [thread:$0]  %s768_s4, 32, %s51_s16, [#allocation6]  }
  0x28   :  { %s641_s22 = scalar_lea.vmem %s60_s18, 2048  ;;  %p646_p2 = scmp.lt.s32.totalorder %s60_s18, %s60_s18 }
  0x29   :  { %p642_p1 = scmp.ne.s32.totalorder %s60_s18, %s641_s22  ;;  %p647_p3 = scmp.lt.s32.totalorder %s641_s22, %s641_s22 }
  0x2b   :  { %p648_p4 = por %p647_p3, %p646_p2 }
  0x2d   :  { %p649_p5 = pnand %p648_p4, %p642_p1 }
  0x2f   :  { %652 = shalt.err (!%p649_p5)
}
  0x30   :  { %s689_s0 = smov 64   ;;  %s690_s23 = smov 4  }
  0x31   :  { %65 = dma.hbm_to_vmem [thread:$0]  %s769_s5, 2048, %s60_s18, [#allocation9], %s689_s0, %s689_s0, %s690_s23  }
  0x32   :  { %673 = dma.done.wait [#allocation3], 128  }
  0x33   :  { %674 = vsyncadd [#allocation3], 4294967168 }
  0x34   :  { %675 = dma.done.wait [#allocation6], 2080  }
  0x35   :  { %676 = vsyncadd [#allocation6], 4294965216 }
  0x36   :  { %677 = dma.done.wait [#allocation9], 2048  }
  0x37   :  { %678 = vsyncadd [#allocation9], 4294965248  ;;  %v691_v0 = vmov 0   ;;  %v81_v1 = vld [vmem:[#allocation2] sm:$0xff]  ;;  %v536_v4 = vld [vmem:[#allocation5 + $0x64] ss:$8 sps:$4 sm:$0xff]   ;;  %v88_v31 = vlaneseq }
  0x38   :  { %531 = vset.pattern.permute.xlu0 %v691_v0  ;;  %253 = vmatprep.mubr.bf16.mxu0 %v691_v0  ;;  %v533_v2 = vld [vmem:[#allocation5 + $0x74] ss:$8 sps:$4 sm:$0xff]   ;;  %v535_v3 = vld [vmem:[#allocation5 + $0x70] ss:$8 sps:$4 sm:$0xff]   ;;  %v538_v5 = vld [vmem:[#allocation5 + $0x60] ss:$8 sps:$4 sm:$0xff]  }
  0x39   :  { %85 = vperm.xlu0 %531, %v81_v1   ;;  %221 = vmatprep.subr.bf16.mxu0 %v533_v2  ;;  %v692_v6 = vmov 1   ;;  %v539_v7 = vld [vmem:[#allocation5 + $0x54] ss:$8 sps:$4 sm:$0xff]   ;;  %v541_v8 = vld [vmem:[#allocation5 + $0x50] ss:$8 sps:$4 sm:$0xff]   ;;  %v563_v21 = vld [vmem:[#allocation8 + $0x60] sm:$0xff]  }
  0x3a   :  { %222 = vmatpush1.bf16.msra.mxu0 %v535_v3  ;;  %v542_v9 = vld [vmem:[#allocation5 + $0x44] ss:$8 sps:$4 sm:$0xff]   ;;  %v544_v10 = vld [vmem:[#allocation5 + $0x40] ss:$8 sps:$4 sm:$0xff]   ;;  %v545_v11 = vld [vmem:[#allocation5 + $0x34] ss:$8 sps:$4 sm:$0xff]  }
  0x3b   :  { %223 = vmatprep.subr.bf16.mxu0 %v536_v4  ;;  %v557_v12 = vld [vmem:[#allocation8 + $0x78] sm:$0xff]   ;;  %v559_v15 = vld [vmem:[#allocation8 + $0x70] sm:$0xff]   ;;  %v561_v17 = vld [vmem:[#allocation8 + $0x68] sm:$0xff]   ;;  %v89_v32 = vshrl.u32 %v88_v31, 7  ;;  %vm441_vm0 = vcmask 39936  }
  0x3c   :  { %v558_v13 = vld [vmem:[#allocation8 + $0x38] sm:$0xff]   ;;  %496 = vmatprep.subr.bf16.mxu1 %v557_v12  ;;  %v560_v16 = vld [vmem:[#allocation8 + $0x30] sm:$0xff]   ;;  %v548_v18 = vld [vmem:[#allocation5 + $0x24] ss:$8 sps:$4 sm:$0xff]  }
  0x3d   :  { %532 = vset.pattern.permute.xlu0 %v692_v6  ;;  %v547_v14 = vld [vmem:[#allocation5 + $0x30] ss:$8 sps:$4 sm:$0xff]   ;;  %497 = vmatpush3.bf16.msra.mxu1 %v558_v13  ;;  %v550_v19 = vld [vmem:[#allocation5 + $0x20] ss:$8 sps:$4 sm:$0xff]   ;;  %v551_v22 = vld [vmem:[#allocation5 + $0x14] ss:$8 sps:$4 sm:$0xff]  }
  0x3e   :  { %94 = vperm.xlu0 %532, %v81_v1   ;;  %224 = vmatpush1.bf16.msra.mxu0 %v538_v5  ;;  %v562_v20 = vld [vmem:[#allocation8 + $0x28] sm:$0xff]   ;;  %v564_v25 = vld [vmem:[#allocation8 + $0x20] sm:$0xff]   ;;  %v565_v26 = vld [vmem:[#allocation8 + $0x58] sm:$0xff]   ;;  %v90_v33 = vsub.s32 0, %v89_v32  ;;  %v99_v34 = vsub.s32 1, %v89_v32 }
  0x3f   :  { %225 = vmatprep.subr.bf16.mxu0 %v539_v7  ;;  %498 = vmatprep.subr.bf16.mxu1 %v559_v15  ;;  %v553_v23 = vld [vmem:[#allocation5 + $0x10] ss:$8 sps:$4 sm:$0xff]   ;;  %v554_v24 = vld [vmem:[#allocation5 + $0x4] ss:$8 sps:$4 sm:$0xff]   ;;  %v556_v28 = vld [vmem:[#allocation5] ss:$8 sps:$4 sm:$0xff]  }
  0x40   :  { %v566_v27 = vld [vmem:[#allocation8 + $0x18] sm:$0xff]   ;;  %v567_v29 = vld [vmem:[#allocation8 + $0x50] sm:$0xff]   ;;  %v569_v47 = vld [vmem:[#allocation8 + $0x48] sm:$0xff]  }
  0x41   :  { %499 = vmatpush3.bf16.msra.mxu1 %v560_v16  ;;  %v568_v30 = vld [vmem:[#allocation8 + $0x10] sm:$0xff]   ;;  %v570_v48 = vld [vmem:[#allocation8 + $0x8] sm:$0xff]   ;;  %v571_v49 = vld [vmem:[#allocation8 + $0x40] sm:$0xff]  }
  0x42   :  { %226 = vmatpush1.bf16.msra.mxu0 %v541_v8  ;;  %500 = vmatprep.subr.bf16.mxu1 %v561_v17  ;;  %v82_v35 = vld [vmem:[%s765_s1] sm:$0x3]  ;;  %v572_v50 = vld [vmem:[#allocation8] sm:$0xff]   ;;  %v129_v51 = vld [vmem:[#allocation7] sm:$0x3] }
  0x43   :  { %227 = vmatprep.subr.bf16.mxu0 %v542_v9  ;;  %v91_v37 = vrot.slane %v82_v35, %v90_v33  ;;  %v100_v38 = vrot.slane %v82_v35, %v99_v34  ;;  %v462_v42 = vld [vmem:[%s766_s2] ss:$0 sm:$0xff]  ;;  %v134_v52 = vrot.slane %v129_v51, %v90_v33  ;;  %v138_v53 = vrot.slane %v129_v51, %v99_v34 }
  0x44   :  { %v479_v1 = vld [vmem:[%s770_s6] ss:$0 sm:$0xff] }
  0x45   :  { %501 = vmatpush3.bf16.msra.mxu1 %v562_v20 }
  0x46   :  { %228 = vmatpush1.bf16.msra.mxu0 %v544_v10  ;;  %502 = vmatprep.subr.bf16.mxu1 %v563_v21 }
  0x47   :  { %229 = vmatprep.subr.bf16.mxu0 %v545_v11 }
  0x49   :  { %503 = vmatpush3.bf16.msra.mxu1 %v564_v25 }
  0x4a   :  { %230 = vmatpush1.bf16.msra.mxu0 %v547_v14  ;;  %504 = vmatprep.subr.bf16.mxu1 %v565_v26 }
  0x4b   :  { %231 = vmatprep.subr.bf16.mxu0 %v548_v18 }
  0x4d   :  { %505 = vmatpush3.bf16.msra.mxu1 %v566_v27 }
  0x4e   :  { %232 = vmatpush1.bf16.msra.mxu0 %v550_v19  ;;  %506 = vmatprep.subr.bf16.mxu1 %v567_v29 }
  0x4f   :  { %233 = vmatprep.subr.bf16.mxu0 %v551_v22 }
  0x51   :  { %507 = vmatpush3.bf16.msra.mxu1 %v568_v30 }
  0x52   :  { %234 = vmatpush1.bf16.msra.mxu0 %v553_v23  ;;  %508 = vmatprep.subr.bf16.mxu1 %v569_v47 }
  0x53   :  { %235 = vmatprep.subr.bf16.mxu0 %v554_v24 }
  0x55   :  { %509 = vmatpush3.bf16.msra.mxu1 %v570_v48 }
  0x56   :  { %236 = vmatpush1.bf16.msra.mxu0 %v556_v28  ;;  %510 = vmatprep.subr.bf16.mxu1 %v571_v49 }
  0x59   :  { %511 = vmatpush3.bf16.msra.mxu1 %v572_v50 }
  0xb4   :  { %v86_v36 = vpop.permute.xlu0 %85 }
  0xb5   :  { %v92_v40 = vmul.f32 %v91_v37, %v86_v36 }
  0xb9   :  { %v95_v39 = vpop.permute.xlu0 %94 }
  0xba   :  { %v101_v41 = vmul.f32 %v100_v38, %v95_v39 }
  0xbc   :  { %v102_v43 = vadd.f32 %v101_v41, %v92_v40 }
  0xbe   :  { %v110_v44 = vadd.f32 %v462_v42, %v102_v43 }
  0xc0   :  { %v111_v45 = vmax.f32 %v110_v44, 0.0 }
  0xc2   :  { %v112_v46 = vpack.c.bf16 %v111_v45, %v111_v45 }
  0xc4   :  { %254 = vmatmul.mubr.bf16.vlgmr.msra.gmra.mxu0 %v112_v46 }
 0x184   :  { %v255_v54 = vpop.f32.mrf.mxu0 }
 0x185   :  { %v256_v55 = vadd.f32 %v255_v54, %v134_v52 }
 0x186   :  { %v257_v56 = vpop.f32.mrf.mxu0 }
 0x187   :  { %v258_v57 = vadd.f32 %v257_v56, %v138_v53  ;;  %v262_v58 = vmax.f32 %v256_v55, 0.0 }
 0x188   :  { %v259_v59 = vpop.f32.mrf.mxu0 }
 0x189   :  { %v263_v60 = vmax.f32 %v258_v57, 0.0  ;;  %v264_v63 = vpack.c.bf16 %v262_v58, %v262_v58 }
 0x18a   :  { %v260_v61 = vpop.f32.mrf.mxu0 }
 0x18b   :  { %v265_v62 = vpack.c.bf16 %v263_v60, %v263_v60 }
 0x18d   :  { %433 = vmatprep.mubr.bf16.mxu1 %v265_v62 }
 0x18e   :  { %434 = vmatmul.mubr.bf16.vlgmr.msra.gmra.mxu1 %v264_v63 }
 0x24e   :  { %v512_v0 = vpop.f32.mrf.mxu1 }
 0x250   :  { %v513_v2 = vpop.f32.mrf.mxu1 }
 0x251   :  { %v514_v3 = vadd.f32 %v513_v2, %v512_v0 }
 0x252   :  { %v515_v4 = vpop.f32.mrf.mxu1 }
 0x253   :  { %v436_v5 = vadd.f32 %v514_v3, %v479_v1 }
 0x254   :  { %v516_v6 = vpop.f32.mrf.mxu1 }
 0x255   :  { %442 = vst.msk [vmem:[#allocation10] sm:$0xff] %vm441_vm0, %v436_v5 }
 0x256   :  { %447 = vsyncadd [#allocation4], 96  ;;  %s693_s28 = smov [#allocation10]  }
 0x257   :  { %s448_s29 = sshll.u32 %s693_s28, 4  ;;  %s449_s29 = int_to_ptr.vmem [resolvable:$true] %s448_s29 }
 0x258   :  { %s653_s30 = scalar_lea.vmem %s449_s29, 32  ;;  %s657_s8 = scalar_lea.vmem %s449_s29, 128 }
 0x259   :  { %p654_p6 = scmp.ne.s32.totalorder %s449_s29, %s653_s30  ;;  %p658_p7 = scmp.lt.s32.totalorder %s449_s29, %s449_s29 }
 0x25a   :  { %p659_p8 = scmp.lt.s32.totalorder %s657_s8, %s653_s30 }
 0x25c   :  { %p660_p9 = por %p659_p8, %p658_p7 }
 0x25e   :  { %p661_p10 = pnand %p660_p9, %p654_p6 }
 0x260   :  { %664 = shalt.err (!%p661_p10)
}
 0x261   :  { %454 = dma.vmem_to_hbm [thread:$0]  %s449_s29, 32, %s771_s7, [#allocation4], %s685_s12, %s685_s12, %s686_s13  }
 0x262   :  { %679 = dma.done.wait [#allocation4], 128  }
 0x263   :  { %680 = vsyncadd [#allocation4], 4294967168 }
 0x264   :  { %458 = vsyncpa [#allocation3], 1 }
 0x265   :  { %459 = vsyncpa [#allocation6], 1 }
 0x266   :  { %460 = vsyncpa [#allocation9], 1 }
 0x267   :  { %461 = vsyncpa [#allocation4], 1 }

</bundles_post_ra>
